<compile_context>
chip_gen: v6e
topology: v6e:2x2x1
jax: 0.10.0
libtpu: 0.0.40
codegen_flags: <defaults>
</compile_context>

<pallas_src>
import jax
import jax.numpy as jnp
from jax.experimental import pallas as pl
from jax.experimental.pallas import tpu as pltpu

_NEG_BIG = -1e30  # logits padding value: exp(-1e30 - m) underflows to 0, no NaN/Inf


def _round_up(x, m):
    return (x + m - 1) // m * m


def _rec_kernel(logits_ref, tgt_ref, mask_ref, out_ref):
    """Per-tile masked NLL partial sum.

    logits_ref : (TILE_N, C_pad)  native dtype (cast to f32 in-kernel)
    tgt_ref    : (TILE_N, 1) int32
    mask_ref   : (TILE_N, 1) f32
    out_ref    : (1, 1, 1)  f32   partial sum for this tile
    """
    logits = logits_ref[...].astype(jnp.float32)
    tgt = tgt_ref[...]                                   # (TILE_N, 1)
    mask = mask_ref[...]                                 # (TILE_N, 1)

    m = jnp.max(logits, axis=-1, keepdims=True)
    lse = jnp.log(jnp.sum(jnp.exp(logits - m), axis=-1, keepdims=True)) + m
    class_iota = jax.lax.broadcasted_iota(jnp.int32, logits.shape, 1)
    # where-select (no one-hot materialization / extra (N,C) multiply)
    tgt_logit = jnp.sum(jnp.where(class_iota == tgt, logits, 0.0),
                        axis=-1, keepdims=True)
    neg_logp = lse - tgt_logit                           # (TILE_N, 1)
    out_ref[...] = jnp.sum(neg_logp * mask, axis=0, keepdims=True).reshape(1, 1, 1)


def _cos_kernel(emb_ref, sem_ref, out_ref):
    """mean(1 - cosine_similarity(emb, sem)) over the batch -> (1, 1)."""
    x1 = emb_ref[...].astype(jnp.float32)
    x2 = sem_ref[...].astype(jnp.float32)
    dot = jnp.sum(x1 * x2, axis=-1, keepdims=True)
    n1sq = jnp.sum(x1 * x1, axis=-1, keepdims=True)
    n2sq = jnp.sum(x2 * x2, axis=-1, keepdims=True)
    # rsqrt -> EUP slot; the max() plays the role of the reference's "+1e-12" guard.
    sim = dot * jax.lax.rsqrt(jnp.maximum(n1sq * n2sq, jnp.float32(1e-24)))
    out_ref[...] = jnp.mean(1.0 - sim, axis=0, keepdims=True)


def aster_loss(rec_pred, targets, label_lengths, embedding_vectors, sem_target,
               *, tile_n=None):
    """rec_pred: (B,T,C); targets: (B,T) int; label_lengths: (B,) int;
    embedding_vectors/sem_target: (B,E). Returns scalar f32 loss."""
    B, T, C = rec_pred.shape
    E = embedding_vectors.shape[1]
    N = B * T

    # --- plain-JAX glue: mask from label_lengths (jit-safe, no host concretization) ---
    seq_iota = jnp.arange(T, dtype=jnp.int32)[None, :]                     # (1, T)
    mask = (seq_iota < label_lengths.astype(jnp.int32)[:, None]).astype(jnp.float32)

    # --- tiling parameters (static, shape-derived) ---
    C_pad = _round_up(C, 128)
    itemsize = jnp.dtype(rec_pred.dtype).itemsize
    if tile_n is None:
        # keep 2 double-buffered logits tiles under ~24 MiB (safe vs 32 MiB scoped limit)
        budget_per_buf = 12 * 1024 * 1024
        tile_n = max(8, min(1024, (budget_per_buf // (C_pad * itemsize)) // 8 * 8))
    tile_n = min(_round_up(max(tile_n, 8), 8), _round_up(N, 8))
    N_pad = _round_up(N, tile_n)
    num_tiles = pl.cdiv(N_pad, tile_n)

    # --- flatten + pad (only copies when padding is actually needed) ---
    logits_flat = rec_pred.reshape(N, C)                       # native dtype (e.g. bf16)
    tgt_flat = targets.reshape(N, 1).astype(jnp.int32)
    mask_flat = mask.reshape(N, 1)
    pad_n, pad_c = N_pad - N, C_pad - C
    if pad_n or pad_c:
        logits_flat = jnp.pad(logits_flat, ((0, pad_n), (0, pad_c)),
                              constant_values=_NEG_BIG)
        if pad_n:
            tgt_flat = jnp.pad(tgt_flat, ((0, pad_n), (0, 0)))      # class 0 (valid column)
            mask_flat = jnp.pad(mask_flat, ((0, pad_n), (0, 0)))    # mask 0 -> contributes 0

    # --- rec branch: tiled stream over N, per-tile partial sums on a parallel axis ---
    rec_partials = pl.pallas_call(
        _rec_kernel,
        out_shape=jax.ShapeDtypeStruct((num_tiles, 1, 1), jnp.float32),
        grid=(num_tiles,),
        in_specs=[
            pl.BlockSpec((tile_n, C_pad), lambda i: (i, 0)),
            pl.BlockSpec((tile_n, 1), lambda i: (i, 0)),
            pl.BlockSpec((tile_n, 1), lambda i: (i, 0)),
        ],
        out_specs=pl.BlockSpec((1, 1, 1), lambda i: (i, 0, 0)),
        compiler_params=pltpu.CompilerParams(
            dimension_semantics=("parallel",),
            vmem_limit_bytes=32 * 1024 * 1024),
    )(logits_flat, tgt_flat, mask_flat)

    # --- semantic branch: tiny (B, E) single-block kernel ---
    sem = pl.pallas_call(
        _cos_kernel,
        out_shape=jax.ShapeDtypeStruct((1, 1), jnp.float32),
        grid=(1,),
        in_specs=[pl.BlockSpec((B, E), lambda i: (0, 0)),
                  pl.BlockSpec((B, E), lambda i: (0, 0))],
        out_specs=pl.BlockSpec((1, 1), lambda i: (0, 0)),
        compiler_params=pltpu.CompilerParams(dimension_semantics=("arbitrary",)),
    )(embedding_vectors, sem_target)

    # final scalar combine (applied exactly once, outside the tiled loop)
    rec_term = jnp.sum(rec_partials) / jnp.float32(B)
    return rec_term + jnp.float32(0.1) * sem[0, 0]


def _reference_loss(rec_pred, targets, label_lengths, emb, sem):
    B, T, C = rec_pred.shape
    seq_iota = jnp.arange(T)[None, :]
    mask = (seq_iota < label_lengths[:, None]).astype(jnp.float32)
    logp = jax.nn.log_softmax(rec_pred.reshape(B * T, C).astype(jnp.float32), axis=-1)
    tgt = targets.reshape(B * T)
    nll = -jnp.take_along_axis(logp, tgt[:, None], axis=-1)[:, 0]
    rec = jnp.sum(nll * mask.reshape(-1)) / B
    sim = jnp.sum(emb * sem, -1) / (jnp.linalg.norm(emb, axis=-1) *
                                    jnp.linalg.norm(sem, axis=-1) + 1e-12)
    sem_loss = jnp.mean(1.0 - sim)
    return rec + 0.1 * sem_loss


if __name__ == "__main__":
    key = jax.random.PRNGKey(0)
    B, T, C, E = 2, 8, 32, 32

    k1, k2, k3, k4 = jax.random.split(key, 4)
    rec_pred = jax.random.normal(k1, (B, T, C), dtype=jnp.float32)
    targets = jax.random.randint(k2, (B, T), 0, C, dtype=jnp.int32)
    label_lengths = jnp.array([T, 5], dtype=jnp.int32)
    embedding_vectors = jax.random.normal(k3, (B, E), dtype=jnp.float32)
    sem_target = jax.random.normal(k4, (B, E), dtype=jnp.float32)

    ref = _reference_loss(rec_pred, targets, label_lengths, embedding_vectors, sem_target)

    # 1) default (auto-sized tile) path
    loss = aster_loss(rec_pred, targets, label_lengths, embedding_vectors, sem_target)
    jax.block_until_ready(loss)
    assert jnp.allclose(loss, ref, rtol=1e-5, atol=1e-5), (loss, ref)

    # 2) forced small tile -> multi-tile "parallel" path (exercises padding + partial sums)
    loss_t = aster_loss(rec_pred, targets, label_lengths, embedding_vectors, sem_target,
                        tile_n=8)
    jax.block_until_ready(loss_t)
    assert jnp.allclose(loss_t, ref, rtol=1e-5, atol=1e-5), (loss_t, ref)

    # 3) jit-safe (no host concretization of label_lengths)
    loss_j = jax.jit(aster_loss)(rec_pred, targets, label_lengths,
                                 embedding_vectors, sem_target)
    jax.block_until_ready(loss_j)
    assert jnp.allclose(loss_j, ref, rtol=1e-5, atol=1e-5), (loss_j, ref)

    print("KERNEL_OK")
</pallas_src>

<mosaic_0001>
module attributes {stable_mosaic.version = 11 : i64} {
  func.func @_rec_kernel(%arg0: i32, %arg1: memref<16x128xf32, #tpu.memory_space<vmem>>, %arg2: memref<16x1xi32, #tpu.memory_space<vmem>>, %arg3: memref<16x1xf32, #tpu.memory_space<vmem>>, %arg4: memref<1x1x1xf32, #tpu.memory_space<vmem>>) attributes {dimension_semantics = [#tpu.dimension_semantics<parallel>], iteration_bounds = array<i64: 1>, scalar_prefetch = 0 : i64, scratch_operands = 0 : i64, tpu.core_type = #tpu.core_type<tc>, window_params = [{transform_indices = @transform_0, window_bounds = array<i64: 16, 128>}, {transform_indices = @transform_1, window_bounds = array<i64: 16, 1>}, {transform_indices = @transform_2, window_bounds = array<i64: 16, 1>}, {transform_indices = @transform_3, window_bounds = array<i64: 1, 1, 1>}]} {
    %c0 = arith.constant 0 : index
    %c0_0 = arith.constant 0 : index
    %0 = vector.load %arg1[%c0, %c0_0] : memref<16x128xf32, #tpu.memory_space<vmem>>, vector<16x128xf32>
    %c0_1 = arith.constant 0 : index
    %c0_2 = arith.constant 0 : index
    %1 = vector.load %arg2[%c0_1, %c0_2] : memref<16x1xi32, #tpu.memory_space<vmem>>, vector<16x1xi32>
    %c0_3 = arith.constant 0 : index
    %c0_4 = arith.constant 0 : index
    %2 = vector.load %arg3[%c0_3, %c0_4] : memref<16x1xf32, #tpu.memory_space<vmem>>, vector<16x1xf32>
    %cst = arith.constant dense<0xFF800000> : vector<16xf32>
    %3 = vector.multi_reduction <maximumf>, %0, %cst [1] : vector<16x128xf32> to vector<16xf32>
    %4 = vector.shape_cast %3 : vector<16xf32> to vector<16x1xf32>
    %5 = vector.broadcast %4 : vector<16x1xf32> to vector<16x128xf32>
    %6 = arith.subf %0, %5 : vector<16x128xf32>
    %7 = math.exp %6 : vector<16x128xf32>
    %cst_5 = arith.constant dense<0.000000e+00> : vector<16xf32>
    %8 = vector.multi_reduction <add>, %7, %cst_5 [1] : vector<16x128xf32> to vector<16xf32>
    %9 = vector.shape_cast %8 : vector<16xf32> to vector<16x1xf32>
    %10 = math.log %9 : vector<16x1xf32>
    %11 = arith.addf %10, %4 : vector<16x1xf32>
    %12 = tpu.iota {dimensions = array<i32: 1>} : vector<16x128xi32>
    %13 = vector.broadcast %1 : vector<16x1xi32> to vector<16x128xi32>
    %14 = arith.cmpi eq, %12, %13 : vector<16x128xi32>
    %cst_6 = arith.constant 0.000000e+00 : f32
    %15 = vector.broadcast %cst_6 : f32 to vector<16x128xf32>
    %16 = arith.select %14, %0, %15 : vector<16x128xi1>, vector<16x128xf32>
    %cst_7 = arith.constant dense<0.000000e+00> : vector<16xf32>
    %17 = vector.multi_reduction <add>, %16, %cst_7 [1] : vector<16x128xf32> to vector<16xf32>
    %18 = vector.shape_cast %17 : vector<16xf32> to vector<16x1xf32>
    %19 = arith.subf %11, %18 : vector<16x1xf32>
    %20 = arith.mulf %19, %2 : vector<16x1xf32>
    %cst_8 = arith.constant dense<0.000000e+00> : vector<1xf32>
    %21 = vector.multi_reduction <add>, %20, %cst_8 [0] : vector<16x1xf32> to vector<1xf32>
    %22 = vector.shape_cast %21 : vector<1xf32> to vector<1x1xf32>
    %23 = vector.shape_cast %22 : vector<1x1xf32> to vector<1x1x1xf32>
    %c0_9 = arith.constant 0 : index
    %c0_10 = arith.constant 0 : index
    %c0_11 = arith.constant 0 : index
    %24 = vector.load %arg4[%c0_9, %c0_10, %c0_11] : memref<1x1x1xf32, #tpu.memory_space<vmem>>, vector<1x1x1xf32>
    tpu.vector_store %arg4[%c0_9, %c0_10, %c0_11], %23 {strides = array<i32>} : memref<1x1x1xf32, #tpu.memory_space<vmem>>, vector<1x1x1xf32>,
    return
  }
  func.func @transform_0(%arg0: i32) -> (i32, i32) {
    %c0_i32 = arith.constant 0 : i32
    %c0_i32_0 = arith.constant 0 : i32
    return %arg0, %c0_i32 : i32, i32
  }
  func.func @transform_1(%arg0: i32) -> (i32, i32) {
    %c0_i32 = arith.constant 0 : i32
    %c0_i32_0 = arith.constant 0 : i32
    return %arg0, %c0_i32 : i32, i32
  }
  func.func @transform_2(%arg0: i32) -> (i32, i32) {
    %c0_i32 = arith.constant 0 : i32
    %c0_i32_0 = arith.constant 0 : i32
    return %arg0, %c0_i32 : i32, i32
  }
  func.func @transform_3(%arg0: i32) -> (i32, i32, i32) {
    %c0_i32 = arith.constant 0 : i32
    %c0_i32_0 = arith.constant 0 : i32
    %c0_i32_1 = arith.constant 0 : i32
    return %arg0, %c0_i32, %c0_i32_0 : i32, i32, i32
  }
}

</mosaic_0001>

<bundles_post_ra>
// kernel: tpu_custom_call.1
= control target key start
LH: loop header
LB: loop body
LE: loop exit
PB: predicated region body
PF: predicated region fallthrough
CT: control target
= control target key end

     0   :  { %v121_v2 = vmov 0   ;;  %s164_s0 = inlined_call_operand.vmem [shape: f32[16,128], index: 0, kind: input, shape index: {}]   ;;  %s165_s1 = inlined_call_operand.vmem [shape: s32[16,1], index: 1, kind: input, shape index: {}]   ;;  %s166_s2 = inlined_call_operand.vmem [shape: f32[16,1], index: 2, kind: input, shape index: {}]   ;;  %s167_s3 = inlined_call_operand.hbm [shape: f32[1,1,1], index: 3, kind: output, shape index: {}]  }
   0x1   :  { %v15_v0 = vld [vmem:[%s164_s0] sm:$0xff]  ;;  %89 = vset.pattern.permute.xlu1 %v121_v2 }
   0x2   :  { %v17_v1 = vld [vmem:[%s165_s1] sm:$0xff]  ;;  %21 = vmax.xlane.f32.xlu0 %v15_v0 }
   0x3   :  { %8 = vsyncpa [#allocation3], 0  ;;  %v16_v3 = vld [vmem:[%s164_s0 + $0x8] sm:$0xff]  ;;  %44 = vperm.xlu1 %89, %v17_v1   ;;  %90 = vset.pattern.permute.xlu0 %v121_v2  ;;  %v41_v11 = vlaneseq  ;;  %v19_v28 = vld [vmem:[%s166_s2] sm:$0xff]  ;;  %vm61_vm2 = vcmask 7168   ;;  %s122_s22 = smov [#allocation2]  }
   0x4   :  { %v18_v4 = vld [vmem:[%s165_s1 + $0x8] sm:$0xff]  ;;  %s79_s23 = sshll.u32 %s122_s22, 4  ;;  %vm71_vm3 = vcmask 0   ;;  %s80_s23 = int_to_ptr.vmem [resolvable:$true] %s79_s23 }
   0x5   :  { %v42_v13 = vand.u32 127, %v41_v11  ;;  %v20_v30 = vld [vmem:[%s166_s2 + $0x8] sm:$0xff]  ;;  %s99_s2 = scalar_lea.vmem %s80_s23, 16  ;;  %s103_s24 = scalar_lea.vmem %s80_s23, 32 }
   0x6   :  { %23 = vmax.xlane.f32.xlu0 %v16_v3  ;;  %p100_p0 = scmp.ne.s32.totalorder %s80_s23, %s99_s2  ;;  %p104_p1 = scmp.lt.s32.totalorder %s80_s23, %s80_s23 }
   0x7   :  { %47 = vperm.xlu1 %89, %v18_v4   ;;  %p105_p2 = scmp.lt.s32.totalorder %s103_s24, %s99_s2 }
   0x9   :  { %p106_p3 = por %p105_p2, %p104_p1 }
   0xb   :  { %p107_p4 = pnand %p106_p3, %p100_p0 }
  0x7e   :  { %v45_v12 = vpop.permute.xlu1 %44 }
  0x7f   :  { %vm49_vm0 = vcmp.eq.s32.totalorder %v42_v13, %v45_v12 }
  0x80   :  { %v51_v16 = vsel %vm49_vm0, %v15_v0, 0.0 }
  0x82   :  { %v48_v15 = vpop.permute.xlu1 %47 }
  0x83   :  { %vm50_vm1 = vcmp.eq.s32.totalorder %v42_v13, %v48_v15 }
  0x84   :  { %v52_v18 = vsel %vm50_vm1, %v16_v3, 0.0 }
  0x8b   :  { %v22_v5 = vpop.xlane.xlu0 %21 }
  0x8c   :  { %v25_v6 = vsub.f32 %v15_v0, %v22_v5 }
  0x8e   :  { %v27_v7 = vmul.f32 1.442695, %v25_v6 }
  0x8f   :  { %v24_v8 = vpop.xlane.xlu0 %23 }
  0x90   :  { %91 = vpow2.f32 %v27_v7  ;;  %v26_v9 = vsub.f32 %v16_v3, %v24_v8 }
  0x92   :  { %v29_v10 = vmul.f32 1.442695, %v26_v9 }
  0x94   :  { %93 = vpow2.f32 %v29_v10 }
  0x9d   :  { %v92_v14 = vpop.eup %91 }
  0x9e   :  { %31 = vadd.xlane.f32.xlu0 %v92_v14 }
  0xa1   :  { %v94_v17 = vpop.eup %93 }
  0xa2   :  { %33 = vadd.xlane.f32.xlu1 %v94_v17  ;;  %53 = vadd.xlane.f32.xlu0 %v51_v16 }
  0xa6   :  { %55 = vadd.xlane.f32.xlu0 %v52_v18 }
 0x127   :  { %v32_v19 = vpop.xlane.xlu0 %31 }
 0x128   :  { %95 = vlog2.f32 %v32_v19 }
 0x12b   :  { %v34_v20 = vpop.xlane.xlu1 %33  ;;  %v54_v23 = vpop.xlane.xlu0 %53 }
 0x12c   :  { %97 = vlog2.f32 %v34_v20 }
 0x12f   :  { %v56_v31 = vpop.xlane.xlu0 %55 }
 0x135   :  { %v96_v21 = vpop.eup %95 }
 0x136   :  { %v36_v22 = vmul.f32 0.6931472, %v96_v21 }
 0x138   :  { %v39_v24 = vadd.f32 %v36_v22, %v22_v5 }
 0x139   :  { %v98_v25 = vpop.eup %97 }
 0x13a   :  { %v38_v26 = vmul.f32 0.6931472, %v98_v25  ;;  %v57_v27 = vsub.f32 %v39_v24, %v54_v23 }
 0x13c   :  { %v40_v29 = vadd.f32 %v38_v26, %v24_v8  ;;  %v59_v32 = vmul.f32 %v57_v27, %v19_v28 }
 0x13e   :  { %v58_v33 = vsub.f32 %v40_v29, %v56_v31  ;;  %v62_v35 = vsel %vm61_vm2, %v59_v32, 0.0 }
 0x140   :  { %v60_v34 = vmul.f32 %v58_v33, %v20_v30 }
 0x142   :  { %v63_v36 = vsel %vm61_vm2, %v60_v34, 0.0 }
 0x143   :  { %v64_v37 = vadd.f32 %v63_v36, %v62_v35 }
 0x145   :  { %v65_v38 = vrot.slane %v64_v37, 4 }
 0x147   :  { %v66_v39 = vadd.f32 %v65_v38, %v64_v37 }
 0x149   :  { %v67_v40 = vrot.slane %v66_v39, 2 }
 0x14b   :  { %v68_v41 = vadd.f32 %v67_v40, %v66_v39 }
 0x14d   :  { %v69_v42 = vrot.slane %v68_v41, 1 }
 0x14f   :  { %v70_v43 = vadd.f32 %v69_v42, %v68_v41 }
 0x151   :  { %72 = vst.msk [vmem:[#allocation2] sm:$0x1] %vm71_vm3, %v70_v43 }
 0x152   :  { %110 = shalt.err (!%p107_p4)
}
 0x153   :  { %82 = dma.vmem_to_hbm [thread:$0]  %s80_s23, 16, %s167_s3, [#allocation3]  }
 0x154   :  { %119 = dma.done.wait [#allocation3], 16  }
 0x155   :  { %120 = vsyncadd [#allocation3], 4294967280 }
 0x156   :  { %86 = vsyncpa [#allocation3], 1 }

</bundles_post_ra>
